<compile_context>
chip_gen: v5e
topology: v5e:2x2
jax: 0.10.0
libtpu: 0.0.40
codegen_flags: <defaults>
</compile_context>

<pallas_src>
import jax
import jax.numpy as jnp
from jax.experimental import pallas as pl
from jax.experimental.pallas import tpu as pltpu


def _channel_norm_kernel(x_ref, mean_ref, scale_ref, o_ref):
    # x_ref:     (row_block, hw_tile)   rows = flattened (n, c)
    # mean_ref:  (row_block, 1)         per-row mean (f32)
    # scale_ref: (row_block, 1)         per-row 1/stddev (f32, precomputed)
    # o_ref:     (row_block, hw_tile)
    x = x_ref[...].astype(jnp.float32)
    o_ref[...] = ((x - mean_ref[...]) * scale_ref[...]).astype(o_ref.dtype)


def _round_up(v, m):
    return ((v + m - 1) // m) * m


def _sublane_multiple(dtype) -> int:
    """Native sublane tile for the dtype: 8 (f32), 16 (bf16), 32 (int8/fp8)."""
    itemsize = jnp.dtype(dtype).itemsize
    return {4: 8, 2: 16, 1: 32}.get(itemsize, 8)


def _choose_tiles(R, HW, itemsize, sublane,
                  lane_cap=4096, target_block_bytes=4 << 20, min_blocks=4):
    """Fixed-budget tiles for a cdiv grid.

    hw_tile: multiple of 128 (lane-dense), capped at lane_cap and at the
    rounded-up spatial extent. row_block: multiple of the dtype's sublane
    tile, sized so one block is ~target_block_bytes. If the resulting grid
    would collapse below min_blocks (leaving a v7x TensorCore idle), split
    rows further (never below one sublane tile).
    """
    hw_tile = min(lane_cap, _round_up(HW, 128))

    rows_budget = max(sublane, target_block_bytes // (hw_tile * itemsize))
    row_block = min(_round_up(R, sublane), (rows_budget // sublane) * sublane)
    row_block = max(row_block, sublane)

    def nblocks(rb):
        return pl.cdiv(R, rb) * pl.cdiv(HW, hw_tile)

    while nblocks(row_block) < min_blocks and row_block > sublane:
        row_block = max(sublane, _round_up(row_block // 2, sublane))

    return row_block, hw_tile


def channel_norm(x, mean, stddev):
    """ChannelNorm eval forward: (x - mean) / stddev.

    x: (N, C, H, W). mean, stddev: (C, 1, 1), broadcast over N, H, W.
    """
    N, C, H, W = x.shape
    HW = H * W
    R = N * C

    # Reshape of a contiguous NCHW array is free (no data movement).
    x2 = x.reshape(R, HW)

    # Precompute per-row mean and reciprocal stddev once in the wrapper
    # (O(N*C) scalars), removing the per-element divide from the hot path.
    mean_c = mean.reshape(C).astype(jnp.float32)
    scale_c = 1.0 / stddev.reshape(C).astype(jnp.float32)
    mean_r = jnp.broadcast_to(mean_c[None, :], (N, C)).reshape(R, 1)
    scale_r = jnp.broadcast_to(scale_c[None, :], (N, C)).reshape(R, 1)

    itemsize = jnp.dtype(x.dtype).itemsize
    sublane = _sublane_multiple(x.dtype)
    row_block, hw_tile = _choose_tiles(R, HW, itemsize, sublane)

    # cdiv grid: ragged tail tiles get masked stores; no wrapper pad/crop.
    grid = (pl.cdiv(R, row_block), pl.cdiv(HW, hw_tile))

    # 2 x (in + out) double-buffered blocks plus f32 intermediates/headroom.
    block_bytes = row_block * hw_tile * max(itemsize, 4)
    vmem_limit = int(min(48 << 20, max(32 << 20, 6 * block_bytes)))

    out = pl.pallas_call(
        _channel_norm_kernel,
        out_shape=jax.ShapeDtypeStruct((R, HW), x.dtype),
        grid_spec=pltpu.PrefetchScalarGridSpec(
            num_scalar_prefetch=0,
            grid=grid,
            in_specs=[
                pl.BlockSpec((row_block, hw_tile), lambda i, j: (i, j)),
                # Block index constant across the innermost (lane) axis, so
                # these tiny per-row blocks are not re-fetched per lane tile.
                pl.BlockSpec((row_block, 1), lambda i, j: (i, 0)),
                pl.BlockSpec((row_block, 1), lambda i, j: (i, 0)),
            ],
            out_specs=pl.BlockSpec((row_block, hw_tile), lambda i, j: (i, j)),
        ),
        compiler_params=pltpu.CompilerParams(
            dimension_semantics=("parallel", "parallel"),
            vmem_limit_bytes=vmem_limit,
        ),
    )(x2, mean_r, scale_r)

    return out.reshape(N, C, H, W)


if __name__ == "__main__":
    # Small shapes consistent with NCHW conv-style input.
    N, C, H, W = 2, 4, 16, 16

    key = jax.random.PRNGKey(0)
    kx, km, ks = jax.random.split(key, 3)

    x = jax.random.normal(kx, (N, C, H, W), dtype=jnp.float32)

    # Module default buffers are mean=0, std=1; use random values to exercise
    # the broadcasting / normalization path. stddev kept away from zero, as
    # the module's update() clamps it to eps.
    eps = 1e-5
    mean = jax.random.normal(km, (C, 1, 1), dtype=jnp.float32)
    stddev = jnp.clip(
        jnp.abs(jax.random.normal(ks, (C, 1, 1), dtype=jnp.float32)) + 0.5,
        eps, None)

    out = channel_norm(x, mean, stddev)
    out = jax.block_until_ready(out)

    # Reference: plain JAX broadcast, matching PyTorch forward_eval.
    ref = (x - mean.reshape(1, C, 1, 1)) / stddev.reshape(1, C, 1, 1)
    assert out.shape == (N, C, H, W)
    # Tolerance allows for reciprocal-multiply vs divide rounding (~2 ulp).
    assert jnp.allclose(out, ref, atol=1e-5, rtol=1e-5)

    print("KERNEL_OK")
</pallas_src>

<mosaic_0001>
module attributes {stable_mosaic.version = 11 : i64} {
  func.func @_channel_norm_kernel(%arg0: i32, %arg1: i32, %arg2: memref<8x256xf32, #tpu.memory_space<vmem>>, %arg3: memref<8x1xf32, #tpu.memory_space<vmem>>, %arg4: memref<8x1xf32, #tpu.memory_space<vmem>>, %arg5: memref<8x256xf32, #tpu.memory_space<vmem>>) attributes {dimension_semantics = [#tpu.dimension_semantics<parallel>, #tpu.dimension_semantics<parallel>], iteration_bounds = array<i64: 1, 1>, scalar_prefetch = 0 : i64, scratch_operands = 0 : i64, tpu.core_type = #tpu.core_type<tc>, window_params = [{transform_indices = @transform_0, window_bounds = array<i64: 8, 256>}, {transform_indices = @transform_1, window_bounds = array<i64: 8, 1>}, {transform_indices = @transform_2, window_bounds = array<i64: 8, 1>}, {transform_indices = @transform_3, window_bounds = array<i64: 8, 256>}]} {
    %c0 = arith.constant 0 : index
    %c0_0 = arith.constant 0 : index
    %0 = vector.load %arg2[%c0, %c0_0] : memref<8x256xf32, #tpu.memory_space<vmem>>, vector<8x256xf32>
    %c0_1 = arith.constant 0 : index
    %c0_2 = arith.constant 0 : index
    %1 = vector.load %arg3[%c0_1, %c0_2] : memref<8x1xf32, #tpu.memory_space<vmem>>, vector<8x1xf32>
    %2 = vector.broadcast %1 : vector<8x1xf32> to vector<8x256xf32>
    %3 = arith.subf %0, %2 : vector<8x256xf32>
    %c0_3 = arith.constant 0 : index
    %c0_4 = arith.constant 0 : index
    %4 = vector.load %arg4[%c0_3, %c0_4] : memref<8x1xf32, #tpu.memory_space<vmem>>, vector<8x1xf32>
    %5 = vector.broadcast %4 : vector<8x1xf32> to vector<8x256xf32>
    %6 = arith.mulf %3, %5 : vector<8x256xf32>
    %c0_5 = arith.constant 0 : index
    %c0_6 = arith.constant 0 : index
    %7 = vector.load %arg5[%c0_5, %c0_6] : memref<8x256xf32, #tpu.memory_space<vmem>>, vector<8x256xf32>
    tpu.vector_store %arg5[%c0_5, %c0_6], %6 {strides = array<i32>} : memref<8x256xf32, #tpu.memory_space<vmem>>, vector<8x256xf32>,
    return
  }
  func.func @transform_0(%arg0: i32, %arg1: i32) -> (i32, i32) {
    %c0_i32 = arith.constant 0 : i32
    return %arg0, %arg1 : i32, i32
  }
  func.func @transform_1(%arg0: i32, %arg1: i32) -> (i32, i32) {
    %c0_i32 = arith.constant 0 : i32
    %c0_i32_0 = arith.constant 0 : i32
    return %arg0, %c0_i32 : i32, i32
  }
  func.func @transform_2(%arg0: i32, %arg1: i32) -> (i32, i32) {
    %c0_i32 = arith.constant 0 : i32
    %c0_i32_0 = arith.constant 0 : i32
    return %arg0, %c0_i32 : i32, i32
  }
  func.func @transform_3(%arg0: i32, %arg1: i32) -> (i32, i32) {
    %c0_i32 = arith.constant 0 : i32
    return %arg0, %arg1 : i32, i32
  }
}

</mosaic_0001>

<bundles_post_ra>
// kernel: tpu_custom_call.1
= control target key start
LH: loop header
LB: loop body
LE: loop exit
PB: predicated region body
PF: predicated region fallthrough
CT: control target
= control target key end

     0   :  { %s117_s0 = inlined_call_operand.vmem [shape: f32[8,256], index: 0, kind: input, shape index: {}]   ;;  %s118_s1 = inlined_call_operand.vmem [shape: f32[8,1], index: 1, kind: input, shape index: {}]   ;;  %s119_s2 = inlined_call_operand.vmem [shape: f32[8,1], index: 2, kind: input, shape index: {}]   ;;  %s120_s3 = inlined_call_operand.hbm [shape: f32[8,256], index: 3, kind: output, shape index: {}]  }
   0x1   :  { %v17_v0 = vld [vmem:[%s118_s1] sm:$0xff] }
   0x2   :  { %8 = vsyncpa [#allocation3], 0  ;;  %v80_v1 = vmov 0   ;;  %v25_v2 = vld [vmem:[%s119_s2] sm:$0xff]  ;;  %v16_v5 = vld [vmem:[%s117_s0 + $0x8] sm:$0xff]  ;;  %s81_s1 = smov [#allocation2]  }
   0x3   :  { %53 = vset.pattern.permute.xlu0 %v80_v1  ;;  %v15_v4 = vld [vmem:[%s117_s0] sm:$0xff]  ;;  %s40_s20 = sshll.u32 %s81_s1, 4  ;;  %s42_s23 = sshll.u32 %s120_s3, 4  ;;  %s41_s20 = int_to_ptr.vmem [resolvable:$true] %s40_s20  ;;  %s43_s23 = int_to_ptr.hbm [resolvable:$true] %s42_s23 }
   0x4   :  { %20 = vperm.xlu0 %53, %v17_v0  }
   0xc   :  { %28 = vperm.xlu0 %53, %v25_v2  }
  0x76   :  { %v21_v3 = vpop.permute.xlu0 %20 }
  0x77   :  { %v23_v6 = vsub.f32 %v15_v4, %v21_v3  ;;  %v24_v7 = vsub.f32 %v16_v5, %v21_v3 }
  0x7e   :  { %v29_v8 = vpop.permute.xlu0 %28 }
  0x7f   :  { %v31_v9 = vmul.f32 %v29_v8, %v23_v6  ;;  %v32_v10 = vmul.f32 %v29_v8, %v24_v7 }
  0x81   :  { %33 = vst [vmem:[#allocation2] sm:$0xff] %v31_v9 }
  0x82   :  { %34 = vst [vmem:[#allocation2 + $0x8] sm:$0xff] %v32_v10 }
  0x83   :  { %45 = dma.vmem_to_hbm [thread:$0]  %s41_s20, 256, %s43_s23, [#allocation3]  }
  0x84   :  { %78 = dma.done.wait [#allocation3], 256  }
  0x85   :  { %79 = vsyncadd [#allocation3], 4294967040 }
  0x86   :  { %50 = vsyncpa [#allocation3], 1 }

</bundles_post_ra>
